<compile_context>
chip_gen: v7x
topology: tpu7x:2x2x1
jax: 0.10.0
libtpu: 0.0.40
codegen_flags: <defaults>
</compile_context>

<pallas_src>
import functools

import jax
import jax.numpy as jnp
from jax.experimental import pallas as pl
from jax.experimental.pallas import tpu as pltpu


def _round_up(x, m):
    return (x + m - 1) // m * m


def convnext_block_kernel(x_ctr_ref, x_prv_ref, x_nxt_ref,
                          dww_ref, dwb_ref, ln_g_ref, ln_b_ref,
                          w1_ref, b1_ref, w2_ref, b2_ref, out_ref, *,
                          tile_T, K, C_real, T_real):
    pad = K // 2
    t = pl.program_id(1)
    C_pad = x_ctr_ref.shape[-1]
    W = tile_T + 16                      # 8 halo rows + tile + 8 halo rows

    window = jnp.concatenate(
        [x_prv_ref[...], x_ctr_ref[...], x_nxt_ref[...]], axis=0
    ).astype(jnp.float32)                # (W, C_pad)

    # Zero rows outside the real sequence [0, T_real): this implements the
    # conv's zero padding and neutralises the clamped halo loads at the ends.
    row_g = t * tile_T - 8 + jax.lax.broadcasted_iota(jnp.int32, (W, 1), 0)
    window = jnp.where((row_g >= 0) & (row_g < T_real), window, 0.0)

    residual = window[8:8 + tile_T, :]   # sublane-aligned slice

    # --- depthwise conv1d (groups == C), kernel K, 'same' zero padding ---
    dww = dww_ref[...].astype(jnp.float32)            # (K, C_pad)
    acc = jnp.zeros((tile_T, C_pad), jnp.float32)
    for k in range(K):                                # static unrolled taps
        off = 8 - pad + k
        acc = acc + window[off:off + tile_T, :] * dww[k:k + 1, :]
    acc = acc + dwb_ref[...].astype(jnp.float32)

    # --- LayerNorm over the C_real real channels (padded lanes are zero) ---
    chan = jax.lax.broadcasted_iota(jnp.int32, (1, C_pad), 1)
    cmask = (chan < C_real).astype(jnp.float32)
    inv_c = jnp.float32(1.0 / C_real)
    mean = jnp.sum(acc, axis=-1, keepdims=True) * inv_c
    cent = (acc - mean) * cmask
    var = jnp.sum(cent * cent, axis=-1, keepdims=True) * inv_c
    xn = cent * jax.lax.rsqrt(var + jnp.float32(1e-5))
    xn = xn * ln_g_ref[...].astype(jnp.float32) + ln_b_ref[...].astype(jnp.float32)

    # --- pointwise expansion -> exact (erf) GELU -> pointwise reduction ---
    # bf16 operands for the MXU, f32 accumulation.
    h = jnp.dot(xn.astype(jnp.bfloat16), w1_ref[...],
                preferred_element_type=jnp.float32)
    h = h + b1_ref[...].astype(jnp.float32)
    h = 0.5 * h * (1.0 + jax.lax.erf(h * jnp.float32(0.7071067811865476)))
    y = jnp.dot(h.astype(jnp.bfloat16), w2_ref[...],
                preferred_element_type=jnp.float32)
    y = y + b2_ref[...].astype(jnp.float32)

    # drop_path is identity (p = 0.0).
    out_ref[...] = (residual + y).astype(out_ref.dtype)


def convnext_block(x, prepped, *, tile_T, kernel_size, C_real, T_real):
    """x: (B, T_pad, C_pad) f32, already padded & lane-dense. Same shape out."""
    B, T_pad, C_pad = x.shape
    nT = T_pad // tile_T
    S = tile_T // 8                       # 8-row blocks per tile
    n_blk8 = T_pad // 8
    dww, dwb, ln_g, ln_b, w1, b1, w2, b2 = prepped

    kernel = functools.partial(convnext_block_kernel, tile_T=tile_T,
                               K=kernel_size, C_real=C_real, T_real=T_real)

    def full_spec(a):
        return pl.BlockSpec(a.shape, lambda b, t: (0, 0))

    return pl.pallas_call(
        kernel,
        out_shape=jax.ShapeDtypeStruct((B, T_pad, C_pad), x.dtype),
        grid=(B, nT),
        in_specs=[
            # center tile
            pl.BlockSpec((None, tile_T, C_pad), lambda b, t: (b, t, 0)),
            # previous 8-row halo strip (clamped at t == 0, masked in-kernel)
            pl.BlockSpec((None, 8, C_pad),
                         lambda b, t: (b, jnp.maximum(t * S - 1, 0), 0)),
            # next 8-row halo strip (clamped at last tile, masked in-kernel)
            pl.BlockSpec((None, 8, C_pad),
                         lambda b, t: (b, jnp.minimum((t + 1) * S, n_blk8 - 1), 0)),
            full_spec(dww), full_spec(dwb), full_spec(ln_g), full_spec(ln_b),
            full_spec(w1), full_spec(b1), full_spec(w2), full_spec(b2),
        ],
        out_specs=pl.BlockSpec((None, tile_T, C_pad), lambda b, t: (b, t, 0)),
        compiler_params=pltpu.CompilerParams(
            dimension_semantics=("parallel", "parallel"),
            vmem_limit_bytes=48 * 1024 * 1024),
    )(x, x, x, dww, dwb, ln_g, ln_b, w1, b1, w2, b2)


def prepare_block_params(p, C, C_pad, hid, hid_pad):
    """PyTorch-convention params -> padded, kernel-ready layout."""
    dww = jnp.transpose(p["dw_weight"][:, 0, :], (1, 0))            # (K, C)
    dww = jnp.pad(dww, ((0, 0), (0, C_pad - C))).astype(jnp.float32)
    dwb = jnp.pad(p["dw_bias"][None, :], ((0, 0), (0, C_pad - C))).astype(jnp.float32)
    ln_g = jnp.pad(p["ln_weight"][None, :], ((0, 0), (0, C_pad - C))).astype(jnp.float32)
    ln_b = jnp.pad(p["ln_bias"][None, :], ((0, 0), (0, C_pad - C))).astype(jnp.float32)
    w1 = jnp.transpose(p["w1"], (1, 0))                             # (C, hid)
    w1 = jnp.pad(w1, ((0, C_pad - C), (0, hid_pad - hid))).astype(jnp.bfloat16)
    b1 = jnp.pad(p["b1"][None, :], ((0, 0), (0, hid_pad - hid))).astype(jnp.float32)
    w2 = jnp.transpose(p["w2"], (1, 0))                             # (hid, C)
    w2 = jnp.pad(w2, ((0, hid_pad - hid), (0, C_pad - C))).astype(jnp.bfloat16)
    b2 = jnp.pad(p["b2"][None, :], ((0, 0), (0, C_pad - C))).astype(jnp.float32)
    return dww, dwb, ln_g, ln_b, w1, b1, w2, b2


def convnext1d_forward(x_bct, blocks_params, *, kernel_size=7, expansion=4,
                       tile_T=256):
    """Matches ConvNext1D.forward: input/output are (B, C, T)."""
    B, C, T = x_bct.shape
    assert kernel_size % 2 == 1 and kernel_size // 2 <= 8
    hid = expansion * C
    C_pad = _round_up(C, 128)
    hid_pad = _round_up(hid, 128)
    tile_T = min(_round_up(tile_T, 8), _round_up(T, 8))
    T_pad = _round_up(T, tile_T)

    x = jnp.transpose(x_bct, (0, 2, 1)).astype(jnp.float32)         # (B, T, C)
    x = jnp.pad(x, ((0, 0), (0, T_pad - T), (0, C_pad - C)))        # lane-dense

    for p in blocks_params:
        prepped = prepare_block_params(p, C, C_pad, hid, hid_pad)
        x = convnext_block(x, prepped, tile_T=tile_T, kernel_size=kernel_size,
                           C_real=C, T_real=T)

    return jnp.transpose(x[:, :T, :C], (0, 2, 1)).astype(x_bct.dtype)


def init_block_params(key, dim, kernel_size=7, expansion=4):
    """Deterministic synthetic params using the PyTorch module's native shapes."""
    ks = jax.random.split(key, 6)
    hid = expansion * dim
    return {
        "dw_weight": 0.1 * jax.random.normal(ks[0], (dim, 1, kernel_size), jnp.float32),
        "dw_bias": 0.1 * jax.random.normal(ks[1], (dim,), jnp.float32),
        "ln_weight": jnp.ones((dim,), jnp.float32),
        "ln_bias": jnp.zeros((dim,), jnp.float32),
        "w1": 0.1 * jax.random.normal(ks[2], (hid, dim), jnp.float32),   # (out, in)
        "b1": 0.1 * jax.random.normal(ks[3], (hid,), jnp.float32),
        "w2": 0.1 * jax.random.normal(ks[4], (dim, hid), jnp.float32),   # (out, in)
        "b2": 0.1 * jax.random.normal(ks[5], (dim,), jnp.float32),
    }


if __name__ == "__main__":
    B, C, T = 2, 8, 16
    depth = 2
    kernel_size = 7

    key = jax.random.PRNGKey(0)
    k_in, *k_blocks = jax.random.split(key, depth + 1)
    x = jax.random.normal(k_in, (B, C, T), jnp.float32)      # (B, C, T) like PyTorch
    all_params = [init_block_params(k, C, kernel_size) for k in k_blocks]

    fwd = jax.jit(functools.partial(convnext1d_forward, kernel_size=kernel_size))
    out = jax.block_until_ready(fwd(x, all_params))
    assert out.shape == (B, C, T) and out.dtype == jnp.float32
    print("KERNEL_OK")
</pallas_src>

<mosaic_0001>
module attributes {stable_mosaic.version = 11 : i64} {
  func.func @convnext_block_kernel(%arg0: i32, %arg1: i32, %arg2: memref<1x16x128xf32, #tpu.memory_space<vmem>>, %arg3: memref<1x8x128xf32, #tpu.memory_space<vmem>>, %arg4: memref<1x8x128xf32, #tpu.memory_space<vmem>>, %arg5: memref<7x128xf32, #tpu.memory_space<vmem>>, %arg6: memref<1x128xf32, #tpu.memory_space<vmem>>, %arg7: memref<1x128xf32, #tpu.memory_space<vmem>>, %arg8: memref<1x128xf32, #tpu.memory_space<vmem>>, %arg9: memref<128x128xbf16, #tpu.memory_space<vmem>>, %arg10: memref<1x128xf32, #tpu.memory_space<vmem>>, %arg11: memref<128x128xbf16, #tpu.memory_space<vmem>>, %arg12: memref<1x128xf32, #tpu.memory_space<vmem>>, %arg13: memref<1x16x128xf32, #tpu.memory_space<vmem>>) attributes {dimension_semantics = [#tpu.dimension_semantics<parallel>, #tpu.dimension_semantics<parallel>], iteration_bounds = array<i64: 2, 1>, scalar_prefetch = 0 : i64, scratch_operands = 0 : i64, tpu.core_type = #tpu.core_type<tc>, window_params = [{transform_indices = @transform_0, window_bounds = array<i64: 1, 16, 128>}, {transform_indices = @transform_1, window_bounds = array<i64: 1, 8, 128>}, {transform_indices = @transform_2, window_bounds = array<i64: 1, 8, 128>}, {pipeline_mode = #tpu.pipeline_mode<synchronous>, transform_indices = @transform_3, window_bounds = array<i64: 7, 128>}, {pipeline_mode = #tpu.pipeline_mode<synchronous>, transform_indices = @transform_4, window_bounds = array<i64: 1, 128>}, {pipeline_mode = #tpu.pipeline_mode<synchronous>, transform_indices = @transform_5, window_bounds = array<i64: 1, 128>}, {pipeline_mode = #tpu.pipeline_mode<synchronous>, transform_indices = @transform_6, window_bounds = array<i64: 1, 128>}, {pipeline_mode = #tpu.pipeline_mode<synchronous>, transform_indices = @transform_7, window_bounds = array<i64: 128, 128>}, {pipeline_mode = #tpu.pipeline_mode<synchronous>, transform_indices = @transform_8, window_bounds = array<i64: 1, 128>}, {pipeline_mode = #tpu.pipeline_mode<synchronous>, transform_indices = @transform_9, window_bounds = array<i64: 128, 128>}, {pipeline_mode = #tpu.pipeline_mode<synchronous>, transform_indices = @transform_10, window_bounds = array<i64: 1, 128>}, {transform_indices = @transform_11, window_bounds = array<i64: 1, 16, 128>}]} {
    %c0 = arith.constant 0 : index
    %c0_0 = arith.constant 0 : index
    %c0_1 = arith.constant 0 : index
    %0 = vector.load %arg3[%c0, %c0_0, %c0_1] : memref<1x8x128xf32, #tpu.memory_space<vmem>>, vector<1x8x128xf32>
    %1 = vector.shape_cast %0 : vector<1x8x128xf32> to vector<8x128xf32>
    %c0_2 = arith.constant 0 : index
    %c0_3 = arith.constant 0 : index
    %c0_4 = arith.constant 0 : index
    %2 = vector.load %arg2[%c0_2, %c0_3, %c0_4] : memref<1x16x128xf32, #tpu.memory_space<vmem>>, vector<1x16x128xf32>
    %3 = vector.shape_cast %2 : vector<1x16x128xf32> to vector<16x128xf32>
    %c0_5 = arith.constant 0 : index
    %c0_6 = arith.constant 0 : index
    %c0_7 = arith.constant 0 : index
    %4 = vector.load %arg4[%c0_5, %c0_6, %c0_7] : memref<1x8x128xf32, #tpu.memory_space<vmem>>, vector<1x8x128xf32>
    %5 = vector.shape_cast %4 : vector<1x8x128xf32> to vector<8x128xf32>
    %6 = tpu.concatenate %1, %3, %5 in 0 : vector<8x128xf32>, vector<16x128xf32>, vector<8x128xf32> -> vector<32x128xf32>
    %c16_i32 = arith.constant 16 : i32
    %7 = arith.muli %arg1, %c16_i32 : i32
    %c8_i32 = arith.constant 8 : i32
    %8 = arith.subi %7, %c8_i32 : i32
    %9 = tpu.iota {dimensions = array<i32: 0>} : vector<32x1xi32>
    %10 = vector.broadcast %8 : i32 to vector<32x1xi32>
    %11 = arith.addi %10, %9 : vector<32x1xi32>
    %c0_i32 = arith.constant 0 : i32
    %12 = vector.broadcast %c0_i32 : i32 to vector<32x1xi32>
    %13 = arith.cmpi sge, %11, %12 : vector<32x1xi32>
    %c16_i32_8 = arith.constant 16 : i32
    %14 = vector.broadcast %c16_i32_8 : i32 to vector<32x1xi32>
    %15 = arith.cmpi slt, %11, %14 : vector<32x1xi32>
    %16 = arith.andi %13, %15 : vector<32x1xi1>
    %cst = arith.constant 0.000000e+00 : f32
    %17 = vector.shape_cast %16 : vector<32x1xi1> to vector<32x1xi1>
    %18 = vector.broadcast %17 : vector<32x1xi1> to vector<32x128xi1>
    %19 = vector.broadcast %cst : f32 to vector<32x128xf32>
    %20 = arith.select %18, %6, %19 : vector<32x128xi1>, vector<32x128xf32>
    %21 = vector.extract_strided_slice %20 {offsets = [8, 0], sizes = [16, 128], strides = [1, 1]} : vector<32x128xf32> to vector<16x128xf32>
    %c0_9 = arith.constant 0 : index
    %c0_10 = arith.constant 0 : index
    %22 = vector.load %arg5[%c0_9, %c0_10] : memref<7x128xf32, #tpu.memory_space<vmem>>, vector<7x128xf32>
    %cst_11 = arith.constant 0.000000e+00 : f32
    %23 = vector.broadcast %cst_11 : f32 to vector<16x128xf32>
    %24 = vector.extract_strided_slice %20 {offsets = [5, 0], sizes = [16, 128], strides = [1, 1]} : vector<32x128xf32> to vector<16x128xf32>
    %25 = vector.extract_strided_slice %22 {offsets = [0, 0], sizes = [1, 128], strides = [1, 1]} : vector<7x128xf32> to vector<1x128xf32>
    %26 = vector.broadcast %25 : vector<1x128xf32> to vector<16x128xf32>
    %27 = arith.mulf %24, %26 : vector<16x128xf32>
    %28 = arith.addf %23, %27 : vector<16x128xf32>
    %29 = vector.extract_strided_slice %20 {offsets = [6, 0], sizes = [16, 128], strides = [1, 1]} : vector<32x128xf32> to vector<16x128xf32>
    %30 = vector.extract_strided_slice %22 {offsets = [1, 0], sizes = [1, 128], strides = [1, 1]} : vector<7x128xf32> to vector<1x128xf32>
    %31 = vector.broadcast %30 : vector<1x128xf32> to vector<16x128xf32>
    %32 = arith.mulf %29, %31 : vector<16x128xf32>
    %33 = arith.addf %28, %32 : vector<16x128xf32>
    %34 = vector.extract_strided_slice %20 {offsets = [7, 0], sizes = [16, 128], strides = [1, 1]} : vector<32x128xf32> to vector<16x128xf32>
    %35 = vector.extract_strided_slice %22 {offsets = [2, 0], sizes = [1, 128], strides = [1, 1]} : vector<7x128xf32> to vector<1x128xf32>
    %36 = vector.broadcast %35 : vector<1x128xf32> to vector<16x128xf32>
    %37 = arith.mulf %34, %36 : vector<16x128xf32>
    %38 = arith.addf %33, %37 : vector<16x128xf32>
    %39 = vector.extract_strided_slice %20 {offsets = [8, 0], sizes = [16, 128], strides = [1, 1]} : vector<32x128xf32> to vector<16x128xf32>
    %40 = vector.extract_strided_slice %22 {offsets = [3, 0], sizes = [1, 128], strides = [1, 1]} : vector<7x128xf32> to vector<1x128xf32>
    %41 = vector.broadcast %40 : vector<1x128xf32> to vector<16x128xf32>
    %42 = arith.mulf %39, %41 : vector<16x128xf32>
    %43 = arith.addf %38, %42 : vector<16x128xf32>
    %44 = vector.extract_strided_slice %20 {offsets = [9, 0], sizes = [16, 128], strides = [1, 1]} : vector<32x128xf32> to vector<16x128xf32>
    %45 = vector.extract_strided_slice %22 {offsets = [4, 0], sizes = [1, 128], strides = [1, 1]} : vector<7x128xf32> to vector<1x128xf32>
    %46 = vector.broadcast %45 : vector<1x128xf32> to vector<16x128xf32>
    %47 = arith.mulf %44, %46 : vector<16x128xf32>
    %48 = arith.addf %43, %47 : vector<16x128xf32>
    %49 = vector.extract_strided_slice %20 {offsets = [10, 0], sizes = [16, 128], strides = [1, 1]} : vector<32x128xf32> to vector<16x128xf32>
    %50 = vector.extract_strided_slice %22 {offsets = [5, 0], sizes = [1, 128], strides = [1, 1]} : vector<7x128xf32> to vector<1x128xf32>
    %51 = vector.broadcast %50 : vector<1x128xf32> to vector<16x128xf32>
    %52 = arith.mulf %49, %51 : vector<16x128xf32>
    %53 = arith.addf %48, %52 : vector<16x128xf32>
    %54 = vector.extract_strided_slice %20 {offsets = [11, 0], sizes = [16, 128], strides = [1, 1]} : vector<32x128xf32> to vector<16x128xf32>
    %55 = vector.extract_strided_slice %22 {offsets = [6, 0], sizes = [1, 128], strides = [1, 1]} : vector<7x128xf32> to vector<1x128xf32>
    %56 = vector.broadcast %55 : vector<1x128xf32> to vector<16x128xf32>
    %57 = arith.mulf %54, %56 : vector<16x128xf32>
    %58 = arith.addf %53, %57 : vector<16x128xf32>
    %c0_12 = arith.constant 0 : index
    %c0_13 = arith.constant 0 : index
    %59 = vector.load %arg6[%c0_12, %c0_13] : memref<1x128xf32, #tpu.memory_space<vmem>>, vector<1x128xf32>
    %60 = vector.broadcast %59 : vector<1x128xf32> to vector<16x128xf32>
    %61 = arith.addf %58, %60 : vector<16x128xf32>
    %62 = tpu.iota {dimensions = array<i32: 1>} : vector<1x128xi32>
    %c8_i32_14 = arith.constant 8 : i32
    %63 = vector.broadcast %c8_i32_14 : i32 to vector<1x128xi32>
    %64 = arith.cmpi slt, %62, %63 : vector<1x128xi32>
    %65 = arith.extui %64 : vector<1x128xi1> to vector<1x128xi32>
    %66 = arith.sitofp %65 : vector<1x128xi32> to vector<1x128xf32>
    %cst_15 = arith.constant dense<0.000000e+00> : vector<16xf32>
    %67 = vector.multi_reduction <add>, %61, %cst_15 [1] : vector<16x128xf32> to vector<16xf32>
    %68 = vector.shape_cast %67 : vector<16xf32> to vector<16x1xf32>
    %cst_16 = arith.constant 1.250000e-01 : f32
    %69 = vector.broadcast %cst_16 : f32 to vector<16x1xf32>
    %70 = arith.mulf %68, %69 : vector<16x1xf32>
    %71 = vector.broadcast %70 : vector<16x1xf32> to vector<16x128xf32>
    %72 = arith.subf %61, %71 : vector<16x128xf32>
    %73 = vector.broadcast %66 : vector<1x128xf32> to vector<16x128xf32>
    %74 = arith.mulf %72, %73 : vector<16x128xf32>
    %75 = arith.mulf %74, %74 : vector<16x128xf32>
    %cst_17 = arith.constant dense<0.000000e+00> : vector<16xf32>
    %76 = vector.multi_reduction <add>, %75, %cst_17 [1] : vector<16x128xf32> to vector<16xf32>
    %77 = vector.shape_cast %76 : vector<16xf32> to vector<16x1xf32>
    %cst_18 = arith.constant 1.250000e-01 : f32
    %78 = vector.broadcast %cst_18 : f32 to vector<16x1xf32>
    %79 = arith.mulf %77, %78 : vector<16x1xf32>
    %cst_19 = arith.constant 9.99999974E-6 : f32
    %80 = vector.broadcast %cst_19 : f32 to vector<16x1xf32>
    %81 = arith.addf %79, %80 : vector<16x1xf32>
    %82 = math.rsqrt %81 : vector<16x1xf32>
    %83 = vector.broadcast %82 : vector<16x1xf32> to vector<16x128xf32>
    %84 = arith.mulf %74, %83 : vector<16x128xf32>
    %c0_20 = arith.constant 0 : index
    %c0_21 = arith.constant 0 : index
    %85 = vector.load %arg7[%c0_20, %c0_21] : memref<1x128xf32, #tpu.memory_space<vmem>>, vector<1x128xf32>
    %86 = vector.broadcast %85 : vector<1x128xf32> to vector<16x128xf32>
    %87 = arith.mulf %84, %86 : vector<16x128xf32>
    %c0_22 = arith.constant 0 : index
    %c0_23 = arith.constant 0 : index
    %88 = vector.load %arg8[%c0_22, %c0_23] : memref<1x128xf32, #tpu.memory_space<vmem>>, vector<1x128xf32>
    %89 = vector.broadcast %88 : vector<1x128xf32> to vector<16x128xf32>
    %90 = arith.addf %87, %89 : vector<16x128xf32>
    %91 = arith.truncf %90 : vector<16x128xf32> to vector<16x128xbf16>
    %c0_24 = arith.constant 0 : index
    %c0_25 = arith.constant 0 : index
    %92 = vector.load %arg9[%c0_24, %c0_25] : memref<128x128xbf16, #tpu.memory_space<vmem>>, vector<128x128xbf16>
    %cst_26 = arith.constant dense<0.000000e+00> : vector<16x128xf32>
    %93 = tpu.matmul %91, %92, %cst_26 {dimension_numbers = #tpu.dot_dimension_numbers<[1], [0], [0], [1], [0, 0, 1, 1], [], []>} : vector<16x128xbf16>, vector<128x128xbf16>, vector<16x128xf32> -> vector<16x128xf32>
    %c0_27 = arith.constant 0 : index
    %c0_28 = arith.constant 0 : index
    %94 = vector.load %arg10[%c0_27, %c0_28] : memref<1x128xf32, #tpu.memory_space<vmem>>, vector<1x128xf32>
    %95 = vector.broadcast %94 : vector<1x128xf32> to vector<16x128xf32>
    %96 = arith.addf %93, %95 : vector<16x128xf32>
    %cst_29 = arith.constant 5.000000e-01 : f32
    %97 = vector.broadcast %cst_29 : f32 to vector<16x128xf32>
    %98 = arith.mulf %97, %96 : vector<16x128xf32>
    %cst_30 = arith.constant 0.707106769 : f32
    %99 = vector.broadcast %cst_30 : f32 to vector<16x128xf32>
    %100 = arith.mulf %96, %99 : vector<16x128xf32>
    %101 = math.erf %100 : vector<16x128xf32>
    %cst_31 = arith.constant 1.000000e+00 : f32
    %102 = vector.broadcast %cst_31 : f32 to vector<16x128xf32>
    %103 = arith.addf %102, %101 : vector<16x128xf32>
    %104 = arith.mulf %98, %103 : vector<16x128xf32>
    %105 = arith.truncf %104 : vector<16x128xf32> to vector<16x128xbf16>
    %c0_32 = arith.constant 0 : index
    %c0_33 = arith.constant 0 : index
    %106 = vector.load %arg11[%c0_32, %c0_33] : memref<128x128xbf16, #tpu.memory_space<vmem>>, vector<128x128xbf16>
    %cst_34 = arith.constant dense<0.000000e+00> : vector<16x128xf32>
    %107 = tpu.matmul %105, %106, %cst_34 {dimension_numbers = #tpu.dot_dimension_numbers<[1], [0], [0], [1], [0, 0, 1, 1], [], []>} : vector<16x128xbf16>, vector<128x128xbf16>, vector<16x128xf32> -> vector<16x128xf32>
    %c0_35 = arith.constant 0 : index
    %c0_36 = arith.constant 0 : index
    %108 = vector.load %arg12[%c0_35, %c0_36] : memref<1x128xf32, #tpu.memory_space<vmem>>, vector<1x128xf32>
    %109 = vector.broadcast %108 : vector<1x128xf32> to vector<16x128xf32>
    %110 = arith.addf %107, %109 : vector<16x128xf32>
    %111 = arith.addf %21, %110 : vector<16x128xf32>
    %c0_37 = arith.constant 0 : index
    %c0_38 = arith.constant 0 : index
    %c0_39 = arith.constant 0 : index
    %112 = vector.load %arg13[%c0_37, %c0_38, %c0_39] : memref<1x16x128xf32, #tpu.memory_space<vmem>>, vector<1x16x128xf32>
    %113 = vector.shape_cast %112 : vector<1x16x128xf32> to vector<16x128xf32>
    %114 = vector.shape_cast %111 : vector<16x128xf32> to vector<1x16x128xf32>
    tpu.vector_store %arg13[%c0_37, %c0_38, %c0_39], %114 {strides = array<i32>} : memref<1x16x128xf32, #tpu.memory_space<vmem>>, vector<1x16x128xf32>,
    return
  }
  func.func @transform_0(%arg0: i32, %arg1: i32) -> (i32, i32, i32) {
    %c0_i32 = arith.constant 0 : i32
    %c0_i32_0 = arith.constant 0 : i32
    return %arg0, %arg1, %c0_i32 : i32, i32, i32
  }
  func.func @transform_1(%arg0: i32, %arg1: i32) -> (i32, i32, i32) {
    %c2_i32 = arith.constant 2 : i32
    %0 = arith.muli %arg1, %c2_i32 : i32
    %c1_i32 = arith.constant 1 : i32
    %1 = arith.subi %0, %c1_i32 : i32
    %c0_i32 = arith.constant 0 : i32
    %2 = arith.maxsi %1, %c0_i32 : i32
    %c0_i32_0 = arith.constant 0 : i32
    %c0_i32_1 = arith.constant 0 : i32
    return %arg0, %2, %c0_i32_0 : i32, i32, i32
  }
  func.func @transform_2(%arg0: i32, %arg1: i32) -> (i32, i32, i32) {
    %c1_i32 = arith.constant 1 : i32
    %0 = arith.addi %arg1, %c1_i32 : i32
    %c2_i32 = arith.constant 2 : i32
    %1 = arith.muli %0, %c2_i32 : i32
    %c1_i32_0 = arith.constant 1 : i32
    %2 = arith.minsi %1, %c1_i32_0 : i32
    %c0_i32 = arith.constant 0 : i32
    %c0_i32_1 = arith.constant 0 : i32
    return %arg0, %2, %c0_i32 : i32, i32, i32
  }
  func.func @transform_3(%arg0: i32, %arg1: i32) -> (i32, i32) {
    %c0_i32 = arith.constant 0 : i32
    %c0_i32_0 = arith.constant 0 : i32
    %c0_i32_1 = arith.constant 0 : i32
    return %c0_i32, %c0_i32_0 : i32, i32
  }
  func.func @transform_4(%arg0: i32, %arg1: i32) -> (i32, i32) {
    %c0_i32 = arith.constant 0 : i32
    %c0_i32_0 = arith.constant 0 : i32
    %c0_i32_1 = arith.constant 0 : i32
    return %c0_i32, %c0_i32_0 : i32, i32
  }
  func.func @transform_5(%arg0: i32, %arg1: i32) -> (i32, i32) {
    %c0_i32 = arith.constant 0 : i32
    %c0_i32_0 = arith.constant 0 : i32
    %c0_i32_1 = arith.constant 0 : i32
    return %c0_i32, %c0_i32_0 : i32, i32
  }
  func.func @transform_6(%arg0: i32, %arg1: i32) -> (i32, i32) {
    %c0_i32 = arith.constant 0 : i32
    %c0_i32_0 = arith.constant 0 : i32
    %c0_i32_1 = arith.constant 0 : i32
    return %c0_i32, %c0_i32_0 : i32, i32
  }
  func.func @transform_7(%arg0: i32, %arg1: i32) -> (i32, i32) {
    %c0_i32 = arith.constant 0 : i32
    %c0_i32_0 = arith.constant 0 : i32
    %c0_i32_1 = arith.constant 0 : i32
    return %c0_i32, %c0_i32_0 : i32, i32
  }
  func.func @transform_8(%arg0: i32, %arg1: i32) -> (i32, i32) {
    %c0_i32 = arith.constant 0 : i32
    %c0_i32_0 = arith.constant 0 : i32
    %c0_i32_1 = arith.constant 0 : i32
    return %c0_i32, %c0_i32_0 : i32, i32
  }
  func.func @transform_9(%arg0: i32, %arg1: i32) -> (i32, i32) {
    %c0_i32 = arith.constant 0 : i32
    %c0_i32_0 = arith.constant 0 : i32
    %c0_i32_1 = arith.constant 0 : i32
    return %c0_i32, %c0_i32_0 : i32, i32
  }
  func.func @transform_10(%arg0: i32, %arg1: i32) -> (i32, i32) {
    %c0_i32 = arith.constant 0 : i32
    %c0_i32_0 = arith.constant 0 : i32
    %c0_i32_1 = arith.constant 0 : i32
    return %c0_i32, %c0_i32_0 : i32, i32
  }
  func.func @transform_11(%arg0: i32, %arg1: i32) -> (i32, i32, i32) {
    %c0_i32 = arith.constant 0 : i32
    %c0_i32_0 = arith.constant 0 : i32
    return %arg0, %arg1, %c0_i32 : i32, i32, i32
  }
}

</mosaic_0001>

<bundles_post_ra>
// kernel: convnext1d_forward.2
= control target key start
LH: loop header
LB: loop body
LE: loop exit
PB: predicated region body
PF: predicated region fallthrough
CT: control target
= control target key end

     0   :  { %s1421_s15 = smov 0   ;;  %s1423_s16 = smov 0   ;;  %s1583_s0 = inlined_call_operand.vmem [shape: f32[2,16,128], index: 0, kind: input, shape index: {}, may-alias: {0,1,2}]   ;;  %s1584_s1 = inlined_call_operand.vmem [shape: f32[2,16,128], index: 1, kind: input, shape index: {}, may-alias: {0,1,2}]   ;;  %s1585_s2 = inlined_call_operand.vmem [shape: f32[2,16,128], index: 2, kind: input, shape index: {}, may-alias: {0,1,2}]   ;;  %s1586_s3 = inlined_call_operand.vmem [shape: f32[7,128], index: 3, kind: input, shape index: {}]   ;;  %s1587_s4 = inlined_call_operand.vmem [shape: f32[1,128], index: 4, kind: input, shape index: {}]   ;;  %s1588_s5 = inlined_call_operand.vmem [shape: f32[1,128], index: 5, kind: input, shape index: {}]   ;;  %s1589_s6 = inlined_call_operand.vmem [shape: f32[1,128], index: 6, kind: input, shape index: {}]   ;;  %s1590_s7 = inlined_call_operand.vmem [shape: bf16[128,128], index: 7, kind: input, shape index: {}]   ;;  %s1591_s8 = inlined_call_operand.vmem [shape: f32[1,128], index: 8, kind: input, shape index: {}]   ;;  %s1592_s9 = inlined_call_operand.vmem [shape: bf16[128,128], index: 9, kind: input, shape index: {}]   ;;  %s1593_s10 = inlined_call_operand.vmem [shape: f32[1,128], index: 10, kind: input, shape index: {}]   ;;  %s1594_s11 = inlined_call_operand.vmem [shape: f32[2,16,128], index: 11, kind: output, shape index: {}]  }
   0x1   :  { %s1425_s17 = smov 0  }
   0x2 LB: > { %s33_s18 = sadd.s32 1, %s1353_s16  ;;  %p1187_p0 = scmp.ge.s32.totalorder %s1357_s17, 1  ;;  %s1357_s17 = sphi %s1425_s17, %s21_s17   ;;  %s1353_s16 = sphi %s1423_s16, %s1596_s16   ;;  %s1349_s15 = sphi %s1421_s15, %s1595_s15  }
   0x3   : > { %p35_p1 = scmp.ge.s32.totalorder %s33_s18, 2  ;;  %p420_p2 = scmp.lt.s32.totalorder %s1357_s17, 3 }
   0x5   : > { %s1598_s18 = smov (%p35_p1, %s33_s18), 0  ;;  %p421_p3 = pnand %p1187_p0, %p420_p2 }
   0x6   : > { %p493_p4 = scmp.lt.s32.totalorder (!%p421_p3), %s1349_s15, 1  ;;  %v586_v0 = vlaneseq (!%p421_p3)  ;;  %v585_v1 = vld [vmem:[%s1586_s3] sm:$0x7f] (!%p421_p3)  ;;  %vm606_vm0 = vcmask (!%p421_p3), 1046528   ;;  %vm628_vm1 = vcmask (!%p421_p3), 1045504   ;;  %vm648_vm2 = vcmask (!%p421_p3), 1044480  }
   0x7   : > { %424 = sbr.rel (%p421_p3) target bundleno = 822 (0x336), region = 64  ;;  %vm668_vm3 = vcmask (!%p421_p3), 1043456   ;;  %vm690_vm4 = vcmask (!%p421_p3), 1042432   ;;  %vm712_vm5 = vcmask (!%p421_p3), 1041408   ;;  %vm739_vm6 = vcmask (!%p421_p3), 1047557  }
   0x8   : > { %v587_v2 = vshrl.u32 (!%p421_p3), %v586_v0, 7  ;;  %vm1360_vm8 = vmmov (!%p421_p3), 0   ;;  %vm825_vm9 = vsmask.f32 (!%p421_p3), 5376 }
   0xa   : > { %v588_v3 = vsub.s32 (!%p421_p3), 0, %v587_v2  ;;  %v598_v4 = vsub.s32 (!%p421_p3), 1, %v587_v2  ;;  %v620_v5 = vsub.s32 (!%p421_p3), 2, %v587_v2  ;;  %v642_v6 = vsub.s32 (!%p421_p3), 3, %v587_v2 }
   0xb   : > { %v660_v7 = vsub.s32 (!%p421_p3), 4, %v587_v2  ;;  %v682_v8 = vsub.s32 (!%p421_p3), 5, %v587_v2  ;;  %v704_v9 = vsub.s32 (!%p421_p3), 6, %v587_v2 }
   0xc   : > { %v589_v12 = vrot.slane (!%p421_p3), %v585_v1, %v588_v3  ;;  %v599_v13 = vrot.slane (!%p421_p3), %v585_v1, %v598_v4  ;;  %v621_v14 = vrot.slane (!%p421_p3), %v585_v1, %v620_v5  ;;  %v643_v15 = vrot.slane (!%p421_p3), %v585_v1, %v642_v6 }
   0xd   : > { %v661_v16 = vrot.slane (!%p421_p3), %v585_v1, %v660_v7  ;;  %v683_v17 = vrot.slane (!%p421_p3), %v585_v1, %v682_v8  ;;  %v705_v18 = vrot.slane (!%p421_p3), %v585_v1, %v704_v9 }
   0xe   : > { %s1600_s15 = smov (!%p493_p4, %s1349_s15), 1  ;;  %v590_v48 = vmul.f32 0.0, %v589_v12  ;;  %v600_v49 = vmul.f32 0.0, %v599_v13  ;;  %v622_v52 = vmul.f32 0.0, %v621_v14 }
   0xf   : > { %s1220_s21 = sshll.u32 %s1600_s15, 4  ;;  %v664_v56 = vmul.f32 0.0, %v661_v16  ;;  %v686_v57 = vmul.f32 0.0, %v683_v17  ;;  %v708_v61 = vmul.f32 0.0, %v705_v18 }
  0x10   : > { %s500_s24 = scalar_lea.vmem %s1583_s0, %s1220_s21  ;;  %v607_v55 = vrot.slane %v600_v49, 1  ;;  %v629_v59 = vrot.slane %v622_v52, 2  ;;  %v1309_v49 = vld [vmem:[%s1590_s7] sm:$0xff]   ;;  %v1312_v52 = vld [vmem:[%s1590_s7 + $0x18] sm:$0xff]   ;;  %s542_s20 = scalar_lea.vmem %s1594_s11, %s1220_s21 }
  0x11   : > { %v1451_v10 = vld [vmem:[%s500_s24] sm:$0xff]  ;;  %v1453_v11 = vld [vmem:[%s500_s24 + $0x8] sm:$0xff]  ;;  %v672_v1 = vrot.slane %v664_v56, 4  ;;  %v694_v2 = vrot.slane %v686_v57, 5  ;;  %v716_v9 = vrot.slane %v708_v61, 6  ;;  %v1316_v56 = vld [vmem:[%s1590_s7 + $0x38] sm:$0xff]  }
  0x12   : > { %v591_v19 = vmul.f32 %v589_v12, %v1451_v10  ;;  %v601_v20 = vmul.f32 %v599_v13, %v1451_v10  ;;  %v602_v21 = vmul.f32 %v599_v13, %v1453_v11  ;;  %v623_v22 = vmul.f32 %v621_v14, %v1451_v10  ;;  %v1317_v57 = vld [vmem:[%s1592_s9] sm:$0xff]  }
  0x13   : > { %v624_v23 = vmul.f32 %v621_v14, %v1453_v11  ;;  %v644_v24 = vmul.f32 %v643_v15, %v1451_v10  ;;  %v645_v25 = vmul.f32 %v643_v15, %v1453_v11  ;;  %v662_v26 = vmul.f32 %v661_v16, %v1451_v10 }
  0x14   : > { %v608_v27 = vrot.slane %v601_v20, 1  ;;  %v610_v28 = vrot.slane %v602_v21, 1  ;;  %v630_v29 = vrot.slane %v623_v22, 2  ;;  %v663_v30 = vmul.f32 %v661_v16, %v1453_v11 }
  0x15   : > { %v632_v31 = vrot.slane %v624_v23, 2  ;;  %v649_v32 = vrot.slane %v644_v24, 3  ;;  %v650_v33 = vrot.slane %v645_v25, 3  ;;  %v669_v34 = vrot.slane %v662_v26, 4 }
  0x16   : > { %v611_v35 = vsel %vm606_vm0, %v608_v27, %v610_v28  ;;  %v670_v36 = vrot.slane %v663_v30, 4  ;;  %v684_v37 = vmul.f32 %v683_v17, %v1451_v10  ;;  %v685_v38 = vmul.f32 %v683_v17, %v1453_v11 }
  0x17   : > { %v616_v39 = vadd.f32 %v611_v35, %v591_v19  ;;  %v633_v40 = vsel %vm628_vm1, %v630_v29, %v632_v31  ;;  %v706_v41 = vmul.f32 %v705_v18, %v1451_v10  ;;  %v651_v42 = vsel %vm648_vm2, %v649_v32, %v650_v33 }
  0x18   : > { %v691_v43 = vrot.slane %v684_v37, 5  ;;  %v692_v44 = vrot.slane %v685_v38, 5  ;;  %v707_v45 = vmul.f32 %v705_v18, %v1453_v11  ;;  %v671_v50 = vsel %vm668_vm3, %v669_v34, %v670_v36 }
  0x19   : > { %v638_v46 = vadd.f32 %v633_v40, %v616_v39  ;;  %v713_v47 = vrot.slane %v706_v41, 6  ;;  %v592_v53 = vmul.f32 %v589_v12, %v1453_v11  ;;  %v609_v63 = vsel %vm606_vm0, %v607_v55, %v608_v27  ;;  %v1196_v12 = vld [vmem:[%s1587_s4] ss:$0 sm:$0xff]  ;;  %v1315_v55 = vld [vmem:[%s1590_s7 + $0x30] sm:$0xff]  }
  0x1a   : > { %v714_v51 = vrot.slane %v707_v45, 6  ;;  %v693_v58 = vsel %vm690_vm4, %v691_v43, %v692_v44  ;;  %v615_v4 = vadd.f32 %v609_v63, %v590_v48  ;;  %v631_v5 = vsel %vm628_vm1, %v629_v59, %v630_v29 }
  0x1b   : > { %v656_v54 = vadd.f32 %v651_v42, %v638_v46  ;;  %v617_v60 = vadd.f32 %v610_v28, %v592_v53  ;;  %v673_v8 = vsel %vm668_vm3, %v670_v36, %v672_v1  ;;  %v695_v16 = vsel %vm690_vm4, %v692_v44, %v694_v2  ;;  %v1313_v53 = vld [vmem:[%s1590_s7 + $0x20] sm:$0xff]  }
  0x1c   : > { %v715_v3 = vsel %vm712_vm5, %v713_v47, %v714_v51  ;;  %v637_v13 = vadd.f32 %v631_v5, %v615_v4  ;;  %v717_v20 = vsel %vm712_vm5, %v714_v51, %v716_v9  ;;  %v1359_v30 = vmov 0.0   ;;  %v1311_v51 = vld [vmem:[%s1590_s7 + $0x10] sm:$0xff]  }
  0x1d   : > { %v678_v62 = vadd.f32 %v671_v50, %v656_v54  ;;  %v639_v6 = vadd.f32 %v632_v31, %v617_v60  ;;  %1243 = vmatprep.subr.bf16.mxu0 %v1359_v30  ;;  %1263 = vmatprep.subr.bf16.mxu1 %v1359_v30  ;;  %v735_v31 = vand.u32 127, %v586_v0  ;;  %v1310_v50 = vld [vmem:[%s1590_s7 + $0x8] sm:$0xff]  }
  0x1e   : > { %v655_v17 = vadd.f32 %v649_v32, %v637_v13  ;;  %1244 = vmatpush3.bf16.msra.mxu0 %v1309_v49  ;;  %v1314_v54 = vld [vmem:[%s1590_s7 + $0x28] sm:$0xff]   ;;  %1259 = vmatprep.mubr.msk.bf16.mxu0 %vm1360_vm8, %v1359_v30  ;;  %v1199_v13 = vld [vmem:[%s1589_s6] ss:$0 sm:$0xff] }
  0x1f   : > { %v700_v7 = vadd.f32 %v693_v58, %v678_v62  ;;  %v657_v14 = vadd.f32 %v650_v33, %v639_v6  ;;  %vm736_vm7 = vcmp.lt.s32.totalorder %v735_v31, 8  ;;  %1245 = vmatprep.subr.bf16.mxu0 %v1359_v30  ;;  %1279 = vmatprep.mubr.msk.bf16.mxu1 %vm1360_vm8, %v1359_v30  ;;  %v1318_v58 = vld [vmem:[%s1592_s9 + $0x8] sm:$0xff]  }
  0x20   : > { %v677_v21 = vadd.f32 %v669_v34, %v655_v17  ;;  %v1197_v34 = vsel %vm736_vm7, 1.0, %v1359_v30  ;;  %1264 = vmatpush3.bf16.msra.mxu1 %v1317_v57  ;;  %v1209_v57 = vld [vmem:[%s1593_s10] ss:$0 sm:$0xff] }
  0x21   : > { %v722_v15 = vadd.f32 %v715_v3, %v700_v7  ;;  %v679_v18 = vadd.f32 %v673_v8, %v657_v14  ;;  %1265 = vmatprep.subr.bf16.mxu1 %v1359_v30  ;;  %v1198_v7 = vld [vmem:[%s1588_s5] ss:$0 sm:$0xff] }
  0x22   : > { %v699_v23 = vadd.f32 %v691_v43, %v677_v21  ;;  %1246 = vmatpush3.bf16.msra.mxu0 %v1310_v50 }
  0x23   : > { %v732_v19 = vadd.f32 %v1196_v12, %v722_v15  ;;  %v701_v22 = vadd.f32 %v695_v16, %v679_v18  ;;  %1247 = vmatprep.subr.bf16.mxu0 %v1359_v30 }
  0x24   : > { %v721_v25 = vadd.f32 %v713_v47, %v699_v23  ;;  %1266 = vmatpush3.bf16.msra.mxu1 %v1318_v58 }
  0x25   : > { %743 = vadd.xlane.f32.xlu1 %v732_v19  ;;  %v723_v24 = vadd.f32 %v717_v20, %v701_v22  ;;  %1267 = vmatprep.subr.bf16.mxu1 %v1359_v30 }
  0x26   : > { %v731_v26 = vadd.f32 %v1196_v12, %v721_v25  ;;  %1248 = vmatpush3.bf16.msra.mxu0 %v1311_v51 }
  0x27   : > { %v733_v27 = vadd.f32 %v1196_v12, %v723_v24  ;;  %1249 = vmatprep.subr.bf16.mxu0 %v1359_v30 }
  0x28   : > { %v740_v28 = vsel %vm739_vm6, %v731_v26, 0.0 }
  0x29   : > { %741 = vadd.xlane.f32.xlu0 %v740_v28  ;;  %v745_v29 = vsel %vm648_vm2, %v733_v27, 0.0 }
  0x2a   : > { %1250 = vmatpush3.bf16.msra.mxu0 %v1312_v52 }
  0x2b   : > { %1251 = vmatprep.subr.bf16.mxu0 %v1359_v30 }
  0x2d   : > { %746 = vadd.xlane.f32.xlu0 %v745_v29 }
  0x2e   : > { %1252 = vmatpush3.bf16.msra.mxu0 %v1313_v53 }
  0x2f   : > { %1253 = vmatprep.subr.bf16.mxu0 %v1359_v30 }
  0x32   : > { %1254 = vmatpush3.bf16.msra.mxu0 %v1314_v54 }
  0x33   : > { %1255 = vmatprep.subr.bf16.mxu0 %v1359_v30 }
  0x36   : > { %1256 = vmatpush3.bf16.msra.mxu0 %v1315_v55 }
  0x37   : > { %1257 = vmatprep.subr.bf16.mxu0 %v1359_v30 }
  0x3a   : > { %1258 = vmatpush3.bf16.msra.mxu0 %v1316_v56 }
  0xb2   : > { %v744_v32 = vpop.xlane.xlu1 %743 }
  0xb3   : > { %v749_v33 = vmul.f32 0.125, %v744_v32 }
  0xb5   : > { %v752_v35 = vsub.f32 %v732_v19, %v749_v33 }
  0xb6   : > { %v742_v38 = vpop.xlane.xlu0 %741 }
  0xb7   : > { %v755_v36 = vmul.f32 %v1197_v34, %v752_v35  ;;  %v748_v39 = vmul.f32 0.125, %v742_v38  ;;  %v1319_v35 = vld [vmem:[%s1592_s9 + $0x10] sm:$0xff]   ;;  %v1322_v38 = vld [vmem:[%s1592_s9 + $0x28] sm:$0xff]  }
  0xb8   : > { %1268 = vmatpush3.bf16.msra.mxu1 %v1319_v35 }
  0xb9   : > { %v758_v37 = vmul.f32 %v755_v36, %v755_v36  ;;  %v751_v40 = vsub.f32 %v731_v26, %v748_v39  ;;  %1269 = vmatprep.subr.bf16.mxu1 %v1359_v30  ;;  %v1323_v39 = vld [vmem:[%s1592_s9 + $0x30] sm:$0xff]  }
  0xba   : > { %v747_v41 = vpop.xlane.xlu0 %746 }
  0xbb   : > { %763 = vadd.xlane.f32.xlu0 %v758_v37  ;;  %v750_v42 = vmul.f32 0.125, %v747_v41  ;;  %v754_v43 = vmul.f32 %v1197_v34, %v751_v40  ;;  %v1321_v37 = vld [vmem:[%s1592_s9 + $0x20] sm:$0xff]   ;;  %v1324_v40 = vld [vmem:[%s1592_s9 + $0x38] sm:$0xff]  }
  0xbc   : > { %v1200_v41 = vld [vmem:[%s1591_s8] ss:$0 sm:$0xff] }
  0xbd   : > { %v753_v44 = vsub.f32 %v733_v27, %v750_v42  ;;  %v757_v45 = vmul.f32 %v754_v43, %v754_v43 }
  0xbf   : > { %v760_v46 = vsel %vm739_vm6, %v757_v45, 0.0  ;;  %v756_v0 = vmul.f32 %v1197_v34, %v753_v44 }
  0xc0   : > { %761 = vadd.xlane.f32.xlu1 %v760_v46 }
  0xc1   : > { %v759_v47 = vmul.f32 %v756_v0, %v756_v0 }
  0xc3   : > { %v765_v48 = vsel %vm648_vm2, %v759_v47, 0.0 }
  0xc4   : > { %766 = vadd.xlane.f32.xlu1 %v765_v48 }
 0x148   : > { %v764_v59 = vpop.xlane.xlu0 %763 }
 0x149   : > { %v769_v60 = vmul.f32 0.125, %v764_v59 }
 0x14b   : > { %v772_v61 = vadd.f32 1e-05, %v769_v60 }
 0x14d   : > { %1325 = vrsqrt.f32 %v772_v61  ;;  %v762_v62 = vpop.xlane.xlu1 %761 }
 0x14e   : > { %v768_v63 = vmul.f32 0.125, %v762_v62 }
 0x150   : > { %v771_v1 = vadd.f32 1e-05, %v768_v63 }
 0x151   : > { %v767_v2 = vpop.xlane.xlu1 %766 }
 0x152   : > { %1327 = vrsqrt.f32 %v771_v1  ;;  %v770_v3 = vmul.f32 0.125, %v767_v2 }
 0x154   : > { %v773_v4 = vadd.f32 1e-05, %v770_v3 }
 0x156   : > { %1329 = vrsqrt.f32 %v773_v4 }
 0x157   : > { %v1326_v5 = vpop.eup %1325 }
 0x158   : > { %v778_v6 = vmul.f32 %v1326_v5, %v755_v36  ;;  %v1320_v36 = vld [vmem:[%s1592_s9 + $0x18] sm:$0xff]  }
 0x159   : > { %1270 = vmatpush3.bf16.msra.mxu1 %v1320_v36 }
 0x15a   : > { %v788_v9 = vmul.f32 %v1198_v7, %v778_v6  ;;  %1271 = vmatprep.subr.bf16.mxu1 %v1359_v30 }
 0x15c   : > { %v1328_v8 = vpop.eup %1327  ;;  %v798_v18 = vadd.f32 %v1199_v13, %v788_v9 }
 0x15d   : > { %v777_v12 = vmul.f32 %v1328_v8, %v754_v43  ;;  %1272 = vmatpush3.bf16.msra.mxu1 %v1321_v37 }
 0x15e   : > { %1273 = vmatprep.subr.bf16.mxu1 %v1359_v30 }
 0x15f   : > { %v787_v14 = vmul.f32 %v1198_v7, %v777_v12 }
 0x160   : > { %v1330_v15 = vpop.eup %1329 }
 0x161   : > { %v779_v16 = vmul.f32 %v1330_v15, %v756_v0  ;;  %v797_v17 = vadd.f32 %v1199_v13, %v787_v14  ;;  %1274 = vmatpush3.bf16.msra.mxu1 %v1322_v38 }
 0x162   : > { %1275 = vmatprep.subr.bf16.mxu1 %v1359_v30 }
 0x163   : > { %v789_v19 = vmul.f32 %v1198_v7, %v779_v16  ;;  %v800_v20 = vpack.c.bf16 %v798_v18, %v797_v17 }
 0x165   : > { %v799_v21 = vadd.f32 %v1199_v13, %v789_v19  ;;  %v827_v22 = vshrl.u32 %v800_v20, 16  ;;  %v830_v23 = vshll.u32 %v800_v20, 16  ;;  %1276 = vmatpush3.bf16.msra.mxu1 %v1323_v39 }
 0x166   : > { %1277 = vmatprep.subr.bf16.mxu1 %v1359_v30 }
 0x167   : > { %v801_v24 = vpack.c.bf16 %v799_v21, %v799_v21  ;;  %v829_v25 = vrot.slane %v827_v22, 2  ;;  %v832_v26 = vrot.slane %v830_v23, 3 }
 0x169   : > { %v835_v27 = vshrl.u32 %v801_v24, 16  ;;  %v838_v28 = vshll.u32 %v801_v24, 16  ;;  %v833_v32 = vor.u32 %v832_v26, %v829_v25  ;;  %1278 = vmatpush3.bf16.msra.mxu1 %v1324_v40 }
 0x16b   : > { %v837_v29 = vrot.slane %v835_v27, 2  ;;  %v840_v31 = vrot.slane %v838_v28, 3 }
 0x16d   : > { %v841_v33 = vor.u32 %v840_v31, %v837_v29 }
 0x16f   : > { %v842_v34 = vsel %vm825_vm9, %v833_v32, %v841_v33 }
 0x170   : > { %1260 = vmatmul.mubr.bf16.vlgmr.msra.gmra.mrb[0].mxu0 %v842_v34 }
 0x243   : > { %v926_v42 = vpop.f32.mrb[0].mxu0 }
 0x244   : > { %v927_v43 = vadd.f32 %v1200_v41, %v926_v42  ;;  %v1261_v44 = vpop.f32.mrb[1].mxu0 }
 0x245   : > { %v929_v45 = vpop.f32.mrb[2].mxu0 }
 0x246   : > { %v935_v46 = vmul.f32 0.70710677, %v927_v43  ;;  %v930_v0 = vadd.f32 %v1200_v41, %v929_v45  ;;  %v1262_v47 = vpop.f32.mrb[3].mxu0  ;;  %v933_v51 = vmul.f32 0.5, %v927_v43 }
 0x248   : > { %1331 = verf.f32 %v935_v46  ;;  %v936_v48 = vmul.f32 0.70710677, %v930_v0  ;;  %v934_v52 = vmul.f32 0.5, %v930_v0 }
 0x24a   : > { %1333 = verf.f32 %v936_v48 }
 0x252   : > { %v1332_v30 = vpop.eup %1331 }
 0x253   : > { %v939_v49 = vadd.f32 1.0, %v1332_v30 }
 0x254   : > { %v1334_v50 = vpop.eup %1333 }
 0x255   : > { %v940_v53 = vadd.f32 1.0, %v1334_v50  ;;  %v941_v54 = vmul.f32 %v939_v49, %v933_v51 }
 0x257   : > { %v942_v55 = vmul.f32 %v940_v53, %v934_v52 }
 0x259   : > { %v943_v56 = vpack.c.bf16 %v942_v55, %v941_v54 }
 0x25b   : > { %1280 = vmatmul.mubr.bf16.vlgmr.msra.gmra.mrb[0].mxu1 %v943_v56 }
 0x32e   : > { %v1049_v58 = vpop.f32.mrb[0].mxu1 }
 0x32f   : > { %v1050_v59 = vadd.f32 %v1209_v57, %v1049_v58  ;;  %v1281_v60 = vpop.f32.mrb[1].mxu1 }
 0x330   : > { %v1052_v61 = vpop.f32.mrb[2].mxu1 }
 0x331   : > { %v1056_v62 = vadd.f32 %v1050_v59, %v1451_v10  ;;  %v1053_v63 = vadd.f32 %v1209_v57, %v1052_v61  ;;  %v1282_v1 = vpop.f32.mrb[3].mxu1 }
 0x333   : > { %1058 = vst [vmem:[%s542_s20] sm:$0xff] %v1056_v62  ;;  %v1057_v2 = vadd.f32 %v1053_v63, %v1453_v11 }
 0x335   : > { %1059 = vst [vmem:[%s542_s20 + $0x8] sm:$0xff] %v1057_v2 }
 0x336 PF: > { %s21_s17 = sadd.s32 1, %s1357_s17   ;;  %s1595_s15 = smov %s1353_s16 }
 0x337   : > { %p18_p5 = scmp.ge.s32.totalorder %s21_s17, 4   ;;  %s1596_s16 = smov %s1598_s18 }
 0x339   :  { %20 = sbr.rel (!%p18_p5) target bundleno = 2 (0x2), region = 100 }

</bundles_post_ra>
